<compile_context>
chip_gen: v7x
topology: tpu7x:2x2x1
jax: 0.10.0
libtpu: 0.0.40
codegen_flags: <defaults>
</compile_context>

<pallas_src>
import functools

import jax
import jax.numpy as jnp
from jax import lax
from jax.experimental import pallas as pl
from jax.experimental.pallas import tpu as pltpu

EPS = 1e-5        # BatchNorm2d default eps
NEG_SLOPE = 0.1   # LeakyReLU(0.1)


def _res_block_kernel(x_ref, mask_ref, w1_ref, b1_ref, w2_ref, b2_ref, out_ref,
                      *, HW, W, use_residual):
    """One repeat of the residual block; the activation stays resident in out_ref.

    Layout: channels on sublanes, flattened N*H*W on lanes (lane-dense).

    x_ref   : (C, HW)          original activation (consumed only at repeat 0)
    mask_ref: (9, HW)   f32    per-tap validity masks (precomputed in wrapper)
    w1_ref  : (1, Cmid, C)     bf16 folded 1x1 conv weight for this repeat
    b1_ref  : (1, Cmid, 1)     f32  folded 1x1 bias (from BN)
    w2_ref  : (1, C, 9*Cmid)   bf16 folded 3x3 conv weight, tap-minor along K
    b2_ref  : (1, C, 1)        f32  folded 3x3 bias (from BN)
    out_ref : (C, HW)          activation, resident across the repeat grid axis
    """
    r = pl.program_id(0)

    # Bring the input into the VMEM-resident output block at the first repeat.
    # Subsequent repeats update it in place; HBM writeback happens only once,
    # after the last repeat (output block index is constant along the r axis).
    @pl.when(r == 0)
    def _():
        out_ref[...] = x_ref[...]

    x = out_ref[...].astype(jnp.float32)                        # (C, HW) resident f32

    # ---- 1x1 conv (+ folded BN) + LeakyReLU(0.1): bf16 MXU, f32 accumulation ----
    y = jnp.dot(w1_ref[0], x.astype(jnp.bfloat16),
                preferred_element_type=jnp.float32) + b1_ref[0]
    y = jnp.where(y > 0, y, NEG_SLOPE * y)                      # (Cmid, HW) f32

    # ---- 3x3 conv, padding=1 (+ folded BN) + LeakyReLU ----
    # Spatial shift (dy-1, dx-1) on the flattened lane axis = lane roll (XLU),
    # masked by the precomputed per-tap validity mask (zero padding + row/image
    # boundary handling).  The 9 taps are stacked along sublanes so the whole
    # 3x3 conv is a single MXU matmul with contraction K = 9*Cmid.
    taps = []
    for dy in range(3):
        for dx in range(3):
            t = 3 * dy + dx
            s = (dy - 1) * W + (dx - 1)                         # tap reads y[:, p + s]
            yt = y if s == 0 else pltpu.roll(y, shift=(-s) % HW, axis=1)
            m = mask_ref[pl.ds(t, 1), :]                        # (1, HW)
            taps.append(yt * m)
    taps = jnp.concatenate(taps, axis=0).astype(jnp.bfloat16)   # (9*Cmid, HW)

    z = jnp.dot(w2_ref[0], taps, preferred_element_type=jnp.float32) + b2_ref[0]
    z = jnp.where(z > 0, z, NEG_SLOPE * z)                      # (C, HW) f32

    if use_residual:
        z = z + x

    out_ref[...] = z.astype(out_ref.dtype)


def _fold_bn(w, gamma, beta, mean, var):
    """Fold eval-mode BatchNorm into conv weight (OIHW) + bias."""
    scale = gamma / jnp.sqrt(var + EPS)
    return w * scale[:, None, None, None], beta - mean * scale


def _make_tap_masks(N, H, W):
    """(9, N*H*W) f32 masks: 1 where tap (dy,dx) reads a valid in-image pixel."""
    p = jnp.arange(N * H * W)
    rem = p % (H * W)
    hh = rem // W
    ww = rem % W
    masks = []
    for dy in range(3):
        for dx in range(3):
            valid = ((hh + (dy - 1) >= 0) & (hh + (dy - 1) < H) &
                     (ww + (dx - 1) >= 0) & (ww + (dx - 1) < W))
            masks.append(valid)
    return jnp.stack(masks).astype(jnp.float32)


def residual_block_pallas(x_nchw, params, use_residual=True):
    N, C, H, W = x_nchw.shape
    Cmid = C // 2
    R = len(params)
    HW = N * H * W

    # Fold BN into conv weights/bias, stack per-repeat, cast MXU operands to bf16.
    w1s, b1s, w2s, b2s = [], [], [], []
    for p in params:
        w1f, b1f = _fold_bn(p["w1"], p["g1"], p["b1"], p["m1"], p["v1"])
        w2f, b2f = _fold_bn(p["w2"], p["g2"], p["b2"], p["m2"], p["v2"])
        w1s.append(w1f[:, :, 0, 0])                                   # (Cmid, C)
        b1s.append(b1f[:, None])                                      # (Cmid, 1)
        # OIHW -> (O, ky, kx, I) -> (C, 9*Cmid): K index = (3*dy+dx)*Cmid + i,
        # matching the tap-staging order in the kernel.
        w2s.append(jnp.transpose(w2f, (0, 2, 3, 1)).reshape(C, 9 * Cmid))
        b2s.append(b2f[:, None])                                      # (C, 1)
    w1k = jnp.stack(w1s).astype(jnp.bfloat16)   # (R, Cmid, C)
    b1k = jnp.stack(b1s)                        # (R, Cmid, 1) f32
    w2k = jnp.stack(w2s).astype(jnp.bfloat16)   # (R, C, 9*Cmid)
    b2k = jnp.stack(b2s)                        # (R, C, 1)    f32

    # NCHW -> (C, N*H*W): channels on sublanes, batch folded into the lane axis
    # so weights are fetched once per repeat and the lane dim is fully dense.
    x_flat = jnp.transpose(x_nchw, (1, 0, 2, 3)).reshape(C, HW)
    masks = _make_tap_masks(N, H, W)            # (9, HW) f32, fetched once

    flops = 2 * R * HW * (Cmid * C + 9 * Cmid * C)
    bytes_accessed = (2 * x_flat.size * 4 + masks.size * 4 +
                      w1k.size * 2 + w2k.size * 2 + b1k.size * 4 + b2k.size * 4)

    kernel = functools.partial(_res_block_kernel, HW=HW, W=W,
                               use_residual=use_residual)

    # TODO(synk): for real YOLO feature-map sizes add a parallel spatial row-tile
    # grid axis (1-row halo) so the activation block is capped at a few MB
    # (v7x 64 MiB VMEM / v5e 16 MiB scoped default) and both v7x TensorCores get
    # work; at these toy shapes a single resident block is optimal.
    out = pl.pallas_call(
        kernel,
        out_shape=jax.ShapeDtypeStruct((C, HW), x_nchw.dtype),
        grid=(R,),
        in_specs=[
            pl.BlockSpec((C, HW), lambda r: (0, 0)),            # x (read once)
            pl.BlockSpec((9, HW), lambda r: (0, 0)),            # masks (read once)
            pl.BlockSpec((1, Cmid, C), lambda r: (r, 0, 0)),    # w1 per repeat
            pl.BlockSpec((1, Cmid, 1), lambda r: (r, 0, 0)),    # b1 per repeat
            pl.BlockSpec((1, C, 9 * Cmid), lambda r: (r, 0, 0)),# w2 per repeat
            pl.BlockSpec((1, C, 1), lambda r: (r, 0, 0)),       # b2 per repeat
        ],
        out_specs=pl.BlockSpec((C, HW), lambda r: (0, 0)),      # resident across r
        compiler_params=pltpu.CompilerParams(
            dimension_semantics=("arbitrary",),
            vmem_limit_bytes=32 * 1024 * 1024),
        cost_estimate=pl.CostEstimate(flops=int(flops), transcendentals=0,
                                      bytes_accessed=int(bytes_accessed)),
    )(x_flat, masks, w1k, b1k, w2k, b2k)
    return jnp.transpose(out.reshape(C, N, H, W), (1, 0, 2, 3))


# ---------------- reference (plain JAX, NCHW like PyTorch) ----------------
def residual_block_ref(x, params, use_residual=True):
    def convblock(inp, w, g, b, m, v, padding):
        y = lax.conv_general_dilated(inp, w, (1, 1), padding,
                                     dimension_numbers=("NCHW", "OIHW", "NCHW"))
        scale = g / jnp.sqrt(v + EPS)
        y = y * scale[None, :, None, None] + (b - m * scale)[None, :, None, None]
        return jnp.where(y > 0, y, NEG_SLOPE * y)

    for p in params:
        y = convblock(x, p["w1"], p["g1"], p["b1"], p["m1"], p["v1"], "VALID")
        y = convblock(y, p["w2"], p["g2"], p["b2"], p["m2"], p["v2"], ((1, 1), (1, 1)))
        x = y + x if use_residual else y
    return x


def init_params(key, channels, n_repeats):
    cmid = channels // 2
    params = []
    for _ in range(n_repeats):
        key, *ks = jax.random.split(key, 11)
        params.append({
            "w1": 0.1 * jax.random.normal(ks[0], (cmid, channels, 1, 1), jnp.float32),
            "g1": 1.0 + 0.1 * jax.random.normal(ks[1], (cmid,), jnp.float32),
            "b1": 0.1 * jax.random.normal(ks[2], (cmid,), jnp.float32),
            "m1": 0.1 * jax.random.normal(ks[3], (cmid,), jnp.float32),
            "v1": jax.random.uniform(ks[4], (cmid,), jnp.float32, 0.5, 1.5),
            "w2": 0.1 * jax.random.normal(ks[5], (channels, cmid, 3, 3), jnp.float32),
            "g2": 1.0 + 0.1 * jax.random.normal(ks[6], (channels,), jnp.float32),
            "b2": 0.1 * jax.random.normal(ks[7], (channels,), jnp.float32),
            "m2": 0.1 * jax.random.normal(ks[8], (channels,), jnp.float32),
            "v2": jax.random.uniform(ks[9], (channels,), jnp.float32, 0.5, 1.5),
        })
    return params


if __name__ == "__main__":
    key = jax.random.PRNGKey(0)
    kx, kp = jax.random.split(key)

    N, C, H, W = 2, 8, 16, 16
    n_repeats = 2
    use_residual = True

    x = jax.random.normal(kx, (N, C, H, W), jnp.float32)
    params = init_params(kp, C, n_repeats)

    out = residual_block_pallas(x, params, use_residual=use_residual)
    out = jax.block_until_ready(out)

    ref = residual_block_ref(x, params, use_residual=use_residual)
    assert out.shape == x.shape
    # Matmul operands are bf16 (MXU-native) with f32 accumulation; elementwise
    # math and the resident activation stay f32, so ~1e-2-level agreement holds.
    if not jnp.allclose(out, ref, atol=2e-2, rtol=2e-2):
        raise AssertionError(
            f"mismatch: max abs err {float(jnp.max(jnp.abs(out - ref)))}")

    print("KERNEL_OK")
</pallas_src>

<mosaic_0001>
module attributes {stable_mosaic.version = 11 : i64} {
  func.func @_res_block_kernel(%arg0: i32, %arg1: memref<8x512xf32, #tpu.memory_space<vmem>>, %arg2: memref<9x512xf32, #tpu.memory_space<vmem>>, %arg3: memref<1x4x8xbf16, #tpu.memory_space<vmem>>, %arg4: memref<1x4x1xf32, #tpu.memory_space<vmem>>, %arg5: memref<1x8x36xbf16, #tpu.memory_space<vmem>>, %arg6: memref<1x8x1xf32, #tpu.memory_space<vmem>>, %arg7: memref<8x512xf32, #tpu.memory_space<vmem>>) attributes {dimension_semantics = [#tpu.dimension_semantics<arbitrary>], iteration_bounds = array<i64: 2>, scalar_prefetch = 0 : i64, scratch_operands = 0 : i64, tpu.core_type = #tpu.core_type<tc>, window_params = [{pipeline_mode = #tpu.pipeline_mode<synchronous>, transform_indices = @transform_0, window_bounds = array<i64: 8, 512>}, {pipeline_mode = #tpu.pipeline_mode<synchronous>, transform_indices = @transform_1, window_bounds = array<i64: 9, 512>}, {transform_indices = @transform_2, window_bounds = array<i64: 1, 4, 8>}, {transform_indices = @transform_3, window_bounds = array<i64: 1, 4, 1>}, {transform_indices = @transform_4, window_bounds = array<i64: 1, 8, 36>}, {transform_indices = @transform_5, window_bounds = array<i64: 1, 8, 1>}, {pipeline_mode = #tpu.pipeline_mode<synchronous>, transform_indices = @transform_6, window_bounds = array<i64: 8, 512>}]} {
    %c0_i32 = arith.constant 0 : i32
    %0 = arith.cmpi eq, %arg0, %c0_i32 : i32
    %1 = arith.extui %0 : i1 to i32
    %c0_i32_0 = arith.constant 0 : i32
    %2 = arith.cmpi ne, %1, %c0_i32_0 : i32
    scf.if %2 {
      %c0_31 = arith.constant 0 : index
      %c0_32 = arith.constant 0 : index
      %68 = vector.load %arg1[%c0_31, %c0_32] : memref<8x512xf32, #tpu.memory_space<vmem>>, vector<8x512xf32>
      %c0_33 = arith.constant 0 : index
      %c0_34 = arith.constant 0 : index
      %69 = vector.load %arg7[%c0_33, %c0_34] : memref<8x512xf32, #tpu.memory_space<vmem>>, vector<8x512xf32>
      tpu.vector_store %arg7[%c0_33, %c0_34], %68 {strides = array<i32>} : memref<8x512xf32, #tpu.memory_space<vmem>>, vector<8x512xf32>,
    } else {
    }
    %c0 = arith.constant 0 : index
    %c0_1 = arith.constant 0 : index
    %3 = vector.load %arg7[%c0, %c0_1] : memref<8x512xf32, #tpu.memory_space<vmem>>, vector<8x512xf32>
    %c0_2 = arith.constant 0 : index
    %c0_3 = arith.constant 0 : index
    %c0_4 = arith.constant 0 : index
    %4 = vector.load %arg3[%c0_2, %c0_3, %c0_4] : memref<1x4x8xbf16, #tpu.memory_space<vmem>>, vector<1x4x8xbf16>
    %5 = vector.shape_cast %4 : vector<1x4x8xbf16> to vector<4x8xbf16>
    %6 = arith.truncf %3 : vector<8x512xf32> to vector<8x512xbf16>
    %cst = arith.constant dense<0.000000e+00> : vector<4x512xf32>
    %7 = tpu.matmul %5, %6, %cst {dimension_numbers = #tpu.dot_dimension_numbers<[1], [0], [0], [1], [0, 0, 1, 1], [], []>} : vector<4x8xbf16>, vector<8x512xbf16>, vector<4x512xf32> -> vector<4x512xf32>
    %c0_5 = arith.constant 0 : index
    %c0_6 = arith.constant 0 : index
    %c0_7 = arith.constant 0 : index
    %8 = vector.load %arg4[%c0_5, %c0_6, %c0_7] : memref<1x4x1xf32, #tpu.memory_space<vmem>>, vector<1x4x1xf32>
    %9 = vector.shape_cast %8 : vector<1x4x1xf32> to vector<4x1xf32>
    %10 = vector.broadcast %9 : vector<4x1xf32> to vector<4x512xf32>
    %11 = arith.addf %7, %10 : vector<4x512xf32>
    %cst_8 = arith.constant 0.000000e+00 : f32
    %12 = vector.broadcast %cst_8 : f32 to vector<4x512xf32>
    %13 = arith.cmpf ogt, %11, %12 : vector<4x512xf32>
    %cst_9 = arith.constant 1.000000e-01 : f32
    %14 = vector.broadcast %cst_9 : f32 to vector<4x512xf32>
    %15 = arith.mulf %14, %11 : vector<4x512xf32>
    %16 = arith.select %13, %11, %15 : vector<4x512xi1>, vector<4x512xf32>
    %c17_i32 = arith.constant 17 : i32
    %17 = tpu.dynamic_rotate %16 by %c17_i32 dim 1 : vector<4x512xf32>, i32 -> vector<4x512xf32>
    %c0_10 = arith.constant 0 : index
    %c0_11 = arith.constant 0 : index
    %18 = vector.load %arg2[%c0_10, %c0_11] : memref<9x512xf32, #tpu.memory_space<vmem>>, vector<1x512xf32>
    %19 = vector.broadcast %18 : vector<1x512xf32> to vector<4x512xf32>
    %20 = arith.mulf %17, %19 : vector<4x512xf32>
    %c16_i32 = arith.constant 16 : i32
    %21 = tpu.dynamic_rotate %16 by %c16_i32 dim 1 : vector<4x512xf32>, i32 -> vector<4x512xf32>
    %c1 = arith.constant 1 : index
    %c0_12 = arith.constant 0 : index
    %22 = vector.load %arg2[%c1, %c0_12] : memref<9x512xf32, #tpu.memory_space<vmem>>, vector<1x512xf32>
    %23 = vector.broadcast %22 : vector<1x512xf32> to vector<4x512xf32>
    %24 = arith.mulf %21, %23 : vector<4x512xf32>
    %c15_i32 = arith.constant 15 : i32
    %25 = tpu.dynamic_rotate %16 by %c15_i32 dim 1 : vector<4x512xf32>, i32 -> vector<4x512xf32>
    %c2 = arith.constant 2 : index
    %c0_13 = arith.constant 0 : index
    %26 = vector.load %arg2[%c2, %c0_13] : memref<9x512xf32, #tpu.memory_space<vmem>>, vector<1x512xf32>
    %27 = vector.broadcast %26 : vector<1x512xf32> to vector<4x512xf32>
    %28 = arith.mulf %25, %27 : vector<4x512xf32>
    %c1_i32 = arith.constant 1 : i32
    %29 = tpu.dynamic_rotate %16 by %c1_i32 dim 1 : vector<4x512xf32>, i32 -> vector<4x512xf32>
    %c3 = arith.constant 3 : index
    %c0_14 = arith.constant 0 : index
    %30 = vector.load %arg2[%c3, %c0_14] : memref<9x512xf32, #tpu.memory_space<vmem>>, vector<1x512xf32>
    %31 = vector.broadcast %30 : vector<1x512xf32> to vector<4x512xf32>
    %32 = arith.mulf %29, %31 : vector<4x512xf32>
    %c4 = arith.constant 4 : index
    %c0_15 = arith.constant 0 : index
    %33 = vector.load %arg2[%c4, %c0_15] : memref<9x512xf32, #tpu.memory_space<vmem>>, vector<1x512xf32>
    %34 = vector.broadcast %33 : vector<1x512xf32> to vector<4x512xf32>
    %35 = arith.mulf %16, %34 : vector<4x512xf32>
    %c511_i32 = arith.constant 511 : i32
    %36 = tpu.dynamic_rotate %16 by %c511_i32 dim 1 : vector<4x512xf32>, i32 -> vector<4x512xf32>
    %c5 = arith.constant 5 : index
    %c0_16 = arith.constant 0 : index
    %37 = vector.load %arg2[%c5, %c0_16] : memref<9x512xf32, #tpu.memory_space<vmem>>, vector<1x512xf32>
    %38 = vector.broadcast %37 : vector<1x512xf32> to vector<4x512xf32>
    %39 = arith.mulf %36, %38 : vector<4x512xf32>
    %c497_i32 = arith.constant 497 : i32
    %40 = tpu.dynamic_rotate %16 by %c497_i32 dim 1 : vector<4x512xf32>, i32 -> vector<4x512xf32>
    %c6 = arith.constant 6 : index
    %c0_17 = arith.constant 0 : index
    %41 = vector.load %arg2[%c6, %c0_17] : memref<9x512xf32, #tpu.memory_space<vmem>>, vector<1x512xf32>
    %42 = vector.broadcast %41 : vector<1x512xf32> to vector<4x512xf32>
    %43 = arith.mulf %40, %42 : vector<4x512xf32>
    %c496_i32 = arith.constant 496 : i32
    %44 = tpu.dynamic_rotate %16 by %c496_i32 dim 1 : vector<4x512xf32>, i32 -> vector<4x512xf32>
    %c7 = arith.constant 7 : index
    %c0_18 = arith.constant 0 : index
    %45 = vector.load %arg2[%c7, %c0_18] : memref<9x512xf32, #tpu.memory_space<vmem>>, vector<1x512xf32>
    %46 = vector.broadcast %45 : vector<1x512xf32> to vector<4x512xf32>
    %47 = arith.mulf %44, %46 : vector<4x512xf32>
    %c495_i32 = arith.constant 495 : i32
    %48 = tpu.dynamic_rotate %16 by %c495_i32 dim 1 : vector<4x512xf32>, i32 -> vector<4x512xf32>
    %c8 = arith.constant 8 : index
    %c0_19 = arith.constant 0 : index
    %49 = vector.load %arg2[%c8, %c0_19] : memref<9x512xf32, #tpu.memory_space<vmem>>, vector<1x512xf32>
    %50 = vector.broadcast %49 : vector<1x512xf32> to vector<4x512xf32>
    %51 = arith.mulf %48, %50 : vector<4x512xf32>
    %52 = tpu.concatenate %20, %24, %28, %32, %35, %39, %43, %47, %51 in 0 : vector<4x512xf32>, vector<4x512xf32>, vector<4x512xf32>, vector<4x512xf32>, vector<4x512xf32>, vector<4x512xf32>, vector<4x512xf32>, vector<4x512xf32>, vector<4x512xf32> -> vector<36x512xf32>
    %53 = arith.truncf %52 : vector<36x512xf32> to vector<36x512xbf16>
    %c0_20 = arith.constant 0 : index
    %c0_21 = arith.constant 0 : index
    %c0_22 = arith.constant 0 : index
    %54 = vector.load %arg5[%c0_20, %c0_21, %c0_22] : memref<1x8x36xbf16, #tpu.memory_space<vmem>>, vector<1x8x36xbf16>
    %55 = vector.shape_cast %54 : vector<1x8x36xbf16> to vector<8x36xbf16>
    %cst_23 = arith.constant dense<0.000000e+00> : vector<8x512xf32>
    %56 = tpu.matmul %55, %53, %cst_23 {dimension_numbers = #tpu.dot_dimension_numbers<[1], [0], [0], [1], [0, 0, 1, 1], [], []>} : vector<8x36xbf16>, vector<36x512xbf16>, vector<8x512xf32> -> vector<8x512xf32>
    %c0_24 = arith.constant 0 : index
    %c0_25 = arith.constant 0 : index
    %c0_26 = arith.constant 0 : index
    %57 = vector.load %arg6[%c0_24, %c0_25, %c0_26] : memref<1x8x1xf32, #tpu.memory_space<vmem>>, vector<1x8x1xf32>
    %58 = vector.shape_cast %57 : vector<1x8x1xf32> to vector<8x1xf32>
    %59 = vector.broadcast %58 : vector<8x1xf32> to vector<8x512xf32>
    %60 = arith.addf %56, %59 : vector<8x512xf32>
    %cst_27 = arith.constant 0.000000e+00 : f32
    %61 = vector.broadcast %cst_27 : f32 to vector<8x512xf32>
    %62 = arith.cmpf ogt, %60, %61 : vector<8x512xf32>
    %cst_28 = arith.constant 1.000000e-01 : f32
    %63 = vector.broadcast %cst_28 : f32 to vector<8x512xf32>
    %64 = arith.mulf %63, %60 : vector<8x512xf32>
    %65 = arith.select %62, %60, %64 : vector<8x512xi1>, vector<8x512xf32>
    %66 = arith.addf %65, %3 : vector<8x512xf32>
    %c0_29 = arith.constant 0 : index
    %c0_30 = arith.constant 0 : index
    %67 = vector.load %arg7[%c0_29, %c0_30] : memref<8x512xf32, #tpu.memory_space<vmem>>, vector<8x512xf32>
    tpu.vector_store %arg7[%c0_29, %c0_30], %66 {strides = array<i32>} : memref<8x512xf32, #tpu.memory_space<vmem>>, vector<8x512xf32>,
    return
  }
  func.func @transform_0(%arg0: i32) -> (i32, i32) {
    %c0_i32 = arith.constant 0 : i32
    %c0_i32_0 = arith.constant 0 : i32
    %c0_i32_1 = arith.constant 0 : i32
    return %c0_i32, %c0_i32_0 : i32, i32
  }
  func.func @transform_1(%arg0: i32) -> (i32, i32) {
    %c0_i32 = arith.constant 0 : i32
    %c0_i32_0 = arith.constant 0 : i32
    %c0_i32_1 = arith.constant 0 : i32
    return %c0_i32, %c0_i32_0 : i32, i32
  }
  func.func @transform_2(%arg0: i32) -> (i32, i32, i32) {
    %c0_i32 = arith.constant 0 : i32
    %c0_i32_0 = arith.constant 0 : i32
    %c0_i32_1 = arith.constant 0 : i32
    return %arg0, %c0_i32, %c0_i32_0 : i32, i32, i32
  }
  func.func @transform_3(%arg0: i32) -> (i32, i32, i32) {
    %c0_i32 = arith.constant 0 : i32
    %c0_i32_0 = arith.constant 0 : i32
    %c0_i32_1 = arith.constant 0 : i32
    return %arg0, %c0_i32, %c0_i32_0 : i32, i32, i32
  }
  func.func @transform_4(%arg0: i32) -> (i32, i32, i32) {
    %c0_i32 = arith.constant 0 : i32
    %c0_i32_0 = arith.constant 0 : i32
    %c0_i32_1 = arith.constant 0 : i32
    return %arg0, %c0_i32, %c0_i32_0 : i32, i32, i32
  }
  func.func @transform_5(%arg0: i32) -> (i32, i32, i32) {
    %c0_i32 = arith.constant 0 : i32
    %c0_i32_0 = arith.constant 0 : i32
    %c0_i32_1 = arith.constant 0 : i32
    return %arg0, %c0_i32, %c0_i32_0 : i32, i32, i32
  }
  func.func @transform_6(%arg0: i32) -> (i32, i32) {
    %c0_i32 = arith.constant 0 : i32
    %c0_i32_0 = arith.constant 0 : i32
    %c0_i32_1 = arith.constant 0 : i32
    return %c0_i32, %c0_i32_0 : i32, i32
  }
}

</mosaic_0001>

<bundles_post_ra>
// kernel: tpu_custom_call.1
= control target key start
LH: loop header
LB: loop body
LE: loop exit
PB: predicated region body
PF: predicated region fallthrough
CT: control target
= control target key end

     0   :  { %11 = vsyncpa [#allocation3], 0  ;;  %s1831_s0 = inlined_call_operand.hbm [shape: f32[8,512], index: 0, kind: input, shape index: {}]   ;;  %s1832_s1 = inlined_call_operand.hbm [shape: f32[9,512], index: 1, kind: input, shape index: {}]   ;;  %s1833_s2 = inlined_call_operand.vmem [shape: bf16[2,4,8], index: 2, kind: input, shape index: {}]   ;;  %s1834_s3 = inlined_call_operand.vmem [shape: f32[2,4,1], index: 3, kind: input, shape index: {}]   ;;  %s1835_s4 = inlined_call_operand.vmem [shape: bf16[2,8,36], index: 4, kind: input, shape index: {}]   ;;  %s1836_s5 = inlined_call_operand.vmem [shape: f32[2,8,1], index: 5, kind: input, shape index: {}]   ;;  %s1837_s6 = inlined_call_operand.hbm [shape: f32[8,512], index: 6, kind: output, shape index: {}]  }
   0x1   :  { %12 = vsyncpa [#allocation6], 0 }
   0x2   :  { %13 = vsyncpa [#allocation4], 0  ;;  %s1332_s21 = smov 0  }
   0x3 LB: > { %s1338_s22 = sadd.s32 4294967295, %s1281_s21   ;;  %p1108_p0 = scmp.ge.s32.totalorder %s1281_s21, 1  ;;  %s1281_s21 = sphi %s1332_s21, %s19_s21  }
   0x4   : > { %p191_p1 = scmp.lt.s32.totalorder %s1281_s21, 3  ;;  %p1838_p3 = scmp.eq.s32.totalorder %s1338_s22, 0 }
   0x5   : > { %s1283_s23 = smov [#allocation2]   ;;  %s1284_s26 = smov [#allocation5]  }
   0x6   : > { %s204_s24 = sshll.u32 %s1283_s23, 4  ;;  %p1344_p4 = pnand %p1108_p0, %p191_p1  ;;  %s205_s24 = int_to_ptr.vmem [resolvable:$true] %s204_s24 }
   0x7   : > { %s214_s27 = sshll.u32 %s1284_s26, 4  ;;  %s1181_s7 = scalar_lea.hbm %s1831_s0, 512  ;;  %s1356_s27 = int_to_ptr.vmem [resolvable:$true] %s214_s27 }
   0x8   : > { %s1840_s25 = scalar_select %p1344_p4, 1, 0 }
   0x9   : > { %p1144_p5 = pneg %p1344_p4  ;;  %p1182_p7 = scmp.ne.s32.totalorder %s1831_s0, %s1181_s7 }
   0xa   : > { %p1188_p11 = scmp.lt.u32.totalorder %s1181_s7, %s1831_s0 }
   0xb   : > { %p1352_p6 = pnand %p1838_p3, %p1144_p5 }
   0xd   : > { %p1183_p8 = pneg %p1352_p6 }
   0xf   : > { %p1184_p9 = pnand %p1183_p8, %p1182_p7 }
  0x11   : > { %p1185_p10 = pneg %p1184_p9 }
  0x13   : > { %p1190_p12 = pnand %p1188_p11, %p1185_p10 }
  0x15   : > { %1193 = shalt.err (!%p1190_p12)
}
  0x16   : > { %s1194_s12 = scalar_lea.vmem %s205_s24, 512  ;;  %p1202_p5 = scmp.lt.s32.totalorder %s205_s24, %s205_s24 }
  0x17   : > { %p1195_p13 = scmp.ne.s32.totalorder %s205_s24, %s1194_s12  ;;  %p1203_p2 = scmp.lt.s32.totalorder %s1194_s12, %s1194_s12 }
  0x19   : > { %p1197_p0 = pnand %p1195_p13, %p1183_p8  ;;  %p1204_p3 = por %p1203_p2, %p1202_p5 }
  0x1b   : > { %p1198_p1 = pneg %p1197_p0 }
  0x1d   : > { %p1205_p4 = pnand %p1204_p3, %p1198_p1 }
  0x1f   : > { %1208 = shalt.err (!%p1205_p4)
}
  0x20   : > { %1147 = dma.hbm_to_vmem [thread:$0]  (!%p1352_p6), %s1831_s0, 512, %s205_s24, [#allocation3]  }
  0x21   : > { %s1209_s17 = scalar_lea.hbm %s1832_s1, 1024 }
  0x22   : > { %p1210_p7 = scmp.ne.s32.totalorder %s1832_s1, %s1209_s17  ;;  %p1216_p4 = scmp.lt.u32.totalorder %s1209_s17, %s1832_s1 }
  0x24   : > { %p1212_p2 = pnand %p1210_p7, %p1183_p8 }
  0x26   : > { %p1213_p3 = pneg %p1212_p2 }
  0x28   : > { %p1218_p9 = pnand %p1216_p4, %p1213_p3 }
  0x2a   : > { %1221 = shalt.err (!%p1218_p9)
}
  0x2b   : > { %s1222_s24 = scalar_lea.vmem %s1356_s27, 1024  ;;  %p1230_p13 = scmp.lt.s32.totalorder %s1356_s27, %s1356_s27 }
  0x2c   : > { %p1223_p10 = scmp.ne.s32.totalorder %s1356_s27, %s1222_s24  ;;  %p1231_p0 = scmp.lt.s32.totalorder %s1222_s24, %s1222_s24 }
  0x2e   : > { %p1225_p11 = pnand %p1223_p10, %p1183_p8  ;;  %p1232_p1 = por %p1231_p0, %p1230_p13 }
  0x30   : > { %p1226_p12 = pneg %p1225_p11 }
  0x32   : > { %p1233_p5 = pnand %p1232_p1, %p1226_p12 }
  0x34   : > { %1236 = shalt.err (!%p1233_p5)
}
  0x35   : > { %s1285_s26 = smov 512   ;;  %s1286_s29 = smov 32  }
  0x36   : > { %1150 = dma.hbm_to_vmem [thread:$0]  (!%p1352_p6), %s1832_s1, 1024, %s1356_s27, [#allocation6], %s1285_s26, %s1285_s26, %s1286_s29  }
  0x37   : > { %p1842_p7 = scmp.ne.s32.totalorder %s1840_s25, 0 }
  0x38   : > { %p1843_p8 = scmp.eq.s32.totalorder (!%p1842_p7), %s1338_s22, 0 }
  0x39   : > { %258 = sbr.rel (%p1842_p7) target bundleno = 723 (0x2d3), region = 44 }
  0x40   : > { %1268 = dma.done.wait (%p1843_p8), [#allocation3], 512   ;;  %p1844_p2 = pmov %p1843_p8 }
  0x42   : > { %1270 = vsyncadd (%p1844_p2), [#allocation3], 4294966784  ;;  %p1845_p3 = pmov %p1844_p2 }
  0x43   : > { %p1846_p4 = pmov %p1844_p2 }
  0x44   : > { %1272 = dma.done.wait (%p1845_p3), [#allocation6], 1024  }
  0x45   : > { %1274 = vsyncadd (%p1846_p4), [#allocation6], 4294966272  ;;  %p298_p9 = scmp.lt.s32.totalorder %s1338_s22, 1  ;;  %p1847_p6 = scmp.ne.s32.totalorder %s1338_s22, 0 }
  0x46   : > { %v319_v0 = vld [vmem:[#allocation2] sm:$0xff] (!%p1847_p6)  ;;  %v320_v1 = vld [vmem:[#allocation2 + $0x8] sm:$0xff] (!%p1847_p6)  ;;  %v321_v2 = vld [vmem:[#allocation2 + $0x10] sm:$0xff] (!%p1847_p6) }
  0x47   : > { %s299_s28 = scalar_select %p298_p9, %s1338_s22, 1 }
  0x48   : > { %318 = sbr.rel (%p1847_p6) target bundleno = 79 (0x4f), region = 56  ;;  %323 = vst [vmem:[#allocation7] sm:$0xff] (!%p1847_p6), %v319_v0  ;;  %324 = vst [vmem:[#allocation7 + $0x8] sm:$0xff] (!%p1847_p6), %v320_v1  ;;  %v322_v3 = vld [vmem:[#allocation2 + $0x18] sm:$0xff] (!%p1847_p6) }
  0x49   : > { %s1115_s27 = sshll.u32 %s299_s28, 1  ;;  %s1116_s8 = sshll.u32 %s299_s28, 2  ;;  %325 = vst [vmem:[#allocation7 + $0x10] sm:$0xff] (!%p1847_p6), %v321_v2  ;;  %326 = vst [vmem:[#allocation7 + $0x18] sm:$0xff] (!%p1847_p6), %v322_v3 }
  0x4a   : > { %s1420_s10 = scalar_lea.vmem %s1833_s2, %s1115_s27  ;;  %s305_s13 = scalar_lea.vmem %s1834_s3, %s1116_s8 }
  0x4b   : > { %s1428_s16 = scalar_lea.vmem %s1835_s4, %s1116_s8  ;;  %s1118_s17 = sshll.u32 %s299_s28, 3 }
  0x4c   : > { %s1433_s20 = scalar_lea.vmem %s1836_s5, %s1118_s17 }
  0x4f PF: > { %v1437_v4 = vld [vmem:[#allocation7 + $0x8] sm:$0xff]  ;;  %vm346_vm0 = vcmask 1043456   ;;  %v1441_v6 = vld [vmem:[#allocation7] sm:$0xff]  ;;  %v1287_v11 = vmov 0   ;;  %vm342_vm1 = vcmask 64512   ;;  %s1288_s23 = smov 16   ;;  %v461_v45 = vlaneseq }
  0x50   : > { %v1439_v5 = vld [vmem:[#allocation7 + $0x18] sm:$0xff]  ;;  %v333_v7 = vpack.c.bf16 %v1437_v4, %v1437_v4  ;;  %v332_v9 = vpack.c.bf16 %v1441_v6, %v1441_v6  ;;  %v1449_v10 = vld [vmem:[#allocation7 + $0x10] sm:$0xff]  ;;  %391 = vmatprep.mubr.bf16.mxu0 %v1287_v11  ;;  %432 = vmatprep.mubr.bf16.mxu1 %v1287_v11  ;;  %v336_v12 = vld [vmem:[%s305_s13] sm:$0xf]  ;;  %s1289_s24 = smov 1   ;;  %s1290_s26 = smov 17  }
  0x51   : > { %v335_v8 = vpack.c.bf16 %v1439_v5, %v1439_v5  ;;  %v334_v13 = vpack.c.bf16 %v1449_v10, %v1449_v10  ;;  %1179 = vset.pattern.permute.xlu0 %v1287_v11  ;;  %1180 = vset.pattern.permute.xlu1 %v1287_v11  ;;  %v331_v16 = vld [vmem:[%s1420_s10] sm:$0x3]  ;;  %s1291_s29 = smov 15   ;;  %s1292_s30 = smov 127   ;;  %v1519_v48 = vand.u32 127, %v461_v45  ;;  %v471_v49 = vshrl.u32 %v461_v45, 7 }
  0x52   : > { %1120 = vmatprep.subr.msk.bf16.mxu0 %vm346_vm0, %v333_v7  ;;  %v348_v14 = vsel %vm346_vm0, %v332_v9, 0  ;;  %339 = vperm.xlu0 %1179, %v336_v12   ;;  %s1293_s7 = smov 112   ;;  %s1294_s28 = smov 113   ;;  %v878_v38 = vld [vmem:[%s1433_s20] sm:$0xff]  ;;  %vm888_vm14 = vcmask 1041408   ;;  %vm884_vm15 = vcmask 293888  }
  0x53   : > { %1122 = vmatprep.subr.msk.bf16.mxu1 %vm346_vm0, %v335_v8  ;;  %360 = vmatpush1.bf16.msra.mxu0 %v348_v14  ;;  %v354_v15 = vsel %vm346_vm0, %v334_v13, 0  ;;  %s1295_s27 = smov 111   ;;  %v1525_v52 = vld [vmem:[#allocation5 + $0x1] ss:$8 sm:$0xf]  ;;  %v1527_v53 = vsub.s32 3, %v471_v49 }
  0x54   : > { %401 = vmatpush1.bf16.msra.mxu1 %v354_v15  ;;  %vm502_vm6 = vcmp.lt.s32.totalorder %v1519_v48, 16  ;;  %v1532_v55 = vsub.s32 0, %v471_v49  ;;  %v1534_v56 = vsub.s32 2, %v471_v49  ;;  %v1536_v57 = vld [vmem:[#allocation5 + $0x3] ss:$8 sm:$0xf] }
  0x55   : > { %v525_v59 = vrot.slane %v1525_v52, %v1527_v53  ;;  %v1542_v60 = vsub.s32 1, %v471_v49  ;;  %vm582_vm7 = vcmp.lt.s32.totalorder %v1519_v48, 1  ;;  %v605_v61 = vrot.slane %v1536_v57, %v1527_v53  ;;  %v1555_v0 = vld [vmem:[#allocation5] ss:$8 sm:$0xf]  ;;  %s1296_s8 = smov [#allocation7]  }
  0x56   : > { %1121 = vmatmul.mubr.msk.bf16.vlgmr.msra.gmra.mrb[0].mxu0 %vm342_vm1, %v331_v16  ;;  %v615_v1 = vld [vmem:[#allocation5 + $0x4] ss:$8 sm:$0xf]  ;;  %vm463_vm8 = vcmp.lt.s32.totalorder %v1519_v48, 17  ;;  %v485_v2 = vrot.slane %v1555_v0, %v1527_v53  ;;  %vm542_vm9 = vcmp.lt.s32.totalorder %v1519_v48, 15  ;;  %v481_v45 = vrot.slane %v1555_v0, %v1534_v56  ;;  %s1010_s25 = sshll.u32 %s1296_s8, 4  ;;  %s1011_s25 = int_to_ptr.vmem [resolvable:$true] %s1010_s25 }
  0x57   : > { %1123 = vmatmul.mubr.msk.bf16.vlgmr.msra.gmra.mrb[0].mxu1 %vm342_vm1, %v331_v16  ;;  %933 = vmatprep.mubr.bf16.mxu0 %v1287_v11  ;;  %v1568_v9 = vld [vmem:[#allocation5 + $0x2] ss:$8 sm:$0xf]  ;;  %v620_v14 = vrot.slane %v615_v1, %v1532_v55  ;;  %v628_v15 = vrot.slane %v615_v1, %v1534_v56  ;;  %v624_v16 = vrot.slane %v615_v1, %v1542_v60  ;;  %vm649_vm10 = vcmp.lt.s32.totalorder %v1519_v48, 127  ;;  %p1155_p10 = scmp.eq.s32.totalorder %s1338_s22, 1  ;;  %s1237_s9 = scalar_lea.vmem %s1011_s25, 512 }
  0x58   : > { %974 = vmatprep.mubr.bf16.mxu1 %v1287_v11  ;;  %v565_v13 = vrot.slane %v1568_v9, %v1527_v53  ;;  %vm729_vm11 = vcmp.lt.s32.totalorder %v1519_v48, 112  ;;  %vm689_vm12 = vcmp.lt.s32.totalorder %v1519_v48, 113  ;;  %vm769_vm13 = vcmp.lt.s32.totalorder %v1519_v48, 111  ;;  %p1238_p11 = scmp.ne.s32.totalorder %s1011_s25, %s1237_s9  ;;  %p1244_p0 = scmp.lt.s32.totalorder %s1011_s25, %s1011_s25 }
  0x59   : > { %p1245_p1 = scmp.lt.s32.totalorder %s1237_s9, %s1237_s9 }
  0x5a   : > { %p1239_p12 = pnand %p1238_p11, %p1155_p10 }
  0x5b   : > { %p1246_p5 = por %p1245_p1, %p1244_p0 }
  0x5c   : > { %p1240_p13 = pneg %p1239_p12 }
  0x5e   : > { %p1247_p7 = pnand %p1246_p5, %p1240_p13 }
  0xd1   : > { %v340_v17 = vpop.permute.xlu0 %339 }
 0x129   : > { %v393_v18 = vpop.f32.mrb[0].mxu0 }
 0x12a   : > { %v394_v19 = vadd.f32 %v393_v18, %v340_v17  ;;  %v434_v20 = vpop.f32.mrb[0].mxu1  ;;  %v395_v21 = vpop.f32.mrb[1].mxu0  ;;  %v513_v18 = vrot.slane %v1525_v52, %v1532_v55 }
 0x12b   : > { %v435_v22 = vadd.f32 %v434_v20, %v340_v17  ;;  %v436_v23 = vpop.f32.mrb[1].mxu1  ;;  %v397_v24 = vpop.f32.mrb[2].mxu0  ;;  %v396_v31 = vadd.f32 %v395_v21, %v340_v17  ;;  %v597_v21 = vrot.slane %v1536_v57, %v1542_v60 }
 0x12c   : > { %vm441_vm2 = vcmp.gt.f32.partialorder %v394_v19, 0.0  ;;  %v445_v25 = vmul.f32 0.1, %v394_v19  ;;  %v437_v26 = vadd.f32 %v436_v23, %v340_v17  ;;  %v438_v27 = vpop.f32.mrb[2].mxu1  ;;  %v398_v28 = vpop.f32.mrb[3].mxu0  ;;  %v632_v17 = vrot.slane %v615_v1, %v1527_v53 }
 0x12d   : > { %vm443_vm3 = vcmp.gt.f32.partialorder %v435_v22, 0.0  ;;  %v447_v29 = vmul.f32 0.1, %v435_v22  ;;  %v439_v33 = vpop.f32.mrb[3].mxu1  ;;  %v446_v35 = vmul.f32 0.1, %v396_v31  ;;  %v593_v23 = vrot.slane %v1536_v57, %v1532_v55 }
 0x12e   : > { %v1458_v30 = vsel %vm441_vm2, %v394_v19, %v445_v25  ;;  %v448_v32 = vmul.f32 0.1, %v437_v26  ;;  %vm444_vm4 = vcmp.gt.f32.partialorder %v437_v26, 0.0  ;;  %vm442_vm5 = vcmp.gt.f32.partialorder %v396_v31, 0.0 }
 0x12f   : > { %v1460_v34 = vsel %vm443_vm3, %v435_v22, %v447_v29  ;;  %494 = vrot.lane.b32.xlu0 %v1458_v30, %s1288_s23  ;;  %v1471_v37 = vsel %vm442_vm5, %v396_v31, %v446_v35  ;;  %v601_v22 = vrot.slane %v1536_v57, %v1534_v56  ;;  %v1591_v29 = vmul.f32 %v620_v14, %v1458_v30 }
 0x130   : > { %498 = vrot.lane.b32.xlu1 %v1460_v34, %s1288_s23  ;;  %v1466_v36 = vsel %vm444_vm4, %v437_v26, %v448_v32  ;;  %v477_v31 = vrot.slane %v1555_v0, %v1542_v60  ;;  %v1595_v32 = vld [vmem:[#allocation5 + $0x5] ss:$8 sm:$0xf]  ;;  %v1598_v33 = vmul.f32 %v628_v15, %v1460_v34  ;;  %v1601_v35 = vmul.f32 %v624_v16, %v1471_v37 }
 0x133   : > { %500 = vrot.lane.b32.xlu0 %v1466_v36, %s1288_s23 }
 0x134   : > { %574 = vrot.lane.b32.xlu1 %v1458_v30, %s1289_s24 }
 0x137   : > { %576 = vrot.lane.b32.xlu0 %v1471_v37, %s1289_s24 }
 0x138   : > { %578 = vrot.lane.b32.xlu1 %v1460_v34, %s1289_s24 }
 0x13b   : > { %580 = vrot.lane.b32.xlu0 %v1466_v36, %s1289_s24 }
 0x13c   : > { %453 = vrot.lane.b32.xlu1 %v1458_v30, %s1290_s26 }
 0x13f   : > { %455 = vrot.lane.b32.xlu0 %v1471_v37, %s1290_s26 }
 0x140   : > { %457 = vrot.lane.b32.xlu1 %v1460_v34, %s1290_s26 }
 0x143   : > { %459 = vrot.lane.b32.xlu0 %v1466_v36, %s1290_s26 }
 0x144   : > { %534 = vrot.lane.b32.xlu1 %v1458_v30, %s1291_s29 }
 0x147   : > { %536 = vrot.lane.b32.xlu0 %v1471_v37, %s1291_s29 }
 0x148   : > { %538 = vrot.lane.b32.xlu1 %v1460_v34, %s1291_s29 }
 0x14b   : > { %540 = vrot.lane.b32.xlu0 %v1466_v36, %s1291_s29 }
 0x14c   : > { %641 = vrot.lane.b32.xlu1 %v1458_v30, %s1292_s30 }
 0x14f   : > { %643 = vrot.lane.b32.xlu0 %v1471_v37, %s1292_s30 }
 0x150   : > { %645 = vrot.lane.b32.xlu1 %v1460_v34, %s1292_s30 }
 0x153   : > { %647 = vrot.lane.b32.xlu0 %v1466_v36, %s1292_s30 }
 0x154   : > { %721 = vrot.lane.b32.xlu1 %v1458_v30, %s1293_s7 }
 0x157   : > { %723 = vrot.lane.b32.xlu0 %v1471_v37, %s1293_s7 }
 0x158   : > { %725 = vrot.lane.b32.xlu1 %v1460_v34, %s1293_s7 }
 0x15b   : > { %727 = vrot.lane.b32.xlu0 %v1466_v36, %s1293_s7 }
 0x15c   : > { %681 = vrot.lane.b32.xlu1 %v1458_v30, %s1294_s28 }
 0x15f   : > { %683 = vrot.lane.b32.xlu0 %v1471_v37, %s1294_s28 }
 0x160   : > { %496 = vrot.lane.b32.xlu1 %v1471_v37, %s1288_s23 }
 0x163   : > { %687 = vrot.lane.b32.xlu0 %v1466_v36, %s1294_s28 }
 0x164   : > { %685 = vrot.lane.b32.xlu1 %v1460_v34, %s1294_s28 }
 0x167   : > { %763 = vrot.lane.b32.xlu0 %v1471_v37, %s1295_s27  ;;  %v561_v37 = vrot.slane %v1568_v9, %v1534_v56 }
 0x168   : > { %761 = vrot.lane.b32.xlu1 %v1458_v30, %s1295_s27  ;;  %v473_v30 = vrot.slane %v1555_v0, %v1532_v55 }
 0x16b   : > { %767 = vrot.lane.b32.xlu0 %v1466_v36, %s1295_s27 }
 0x16c   : > { %765 = vrot.lane.b32.xlu1 %v1460_v34, %s1295_s27  ;;  %v557_v34 = vrot.slane %v1568_v9, %v1542_v60 }
 0x170   : > { %881 = vperm.xlu1 %1180, %v878_v38   ;;  %v1604_v38 = vmul.f32 %v632_v17, %v1466_v36  ;;  %v553_v36 = vrot.slane %v1568_v9, %v1532_v55 }
 0x1a1   : > { %v1503_v39 = vpop.permute.xlu0 %494 }
 0x1a2   : > { %v1505_v40 = vpop.permute.xlu1 %498 }
 0x1a5   : > { %v1507_v41 = vpop.permute.xlu0 %500 }
 0x1a6   : > { %v1509_v42 = vpop.permute.xlu1 %574  ;;  %v503_v62 = vsel %vm502_vm6, %v1505_v40, %v1507_v41  ;;  %v506_v1 = vsel %vm502_vm6, %v1507_v41, %v1503_v39  ;;  %v668_v41 = vrot.slane %v1595_v32, %v1534_v56 }
 0x1a7   : > { %v533_v11 = vmul.f32 %v525_v59, %v503_v62 }
 0x1a9   : > { %v1511_v43 = vpop.permute.xlu0 %576  ;;  %v808_v26 = vrot.slane %v533_v11, 4 }
 0x1aa   : > { %v1513_v44 = vpop.permute.xlu1 %578  ;;  %v585_v9 = vsel %vm582_vm7, %v1509_v42, %v1511_v43 }
 0x1ad   : > { %v1515_v46 = vpop.permute.xlu0 %580 }
 0x1ae   : > { %v1517_v47 = vpop.permute.xlu1 %453  ;;  %v583_v63 = vsel %vm582_vm7, %v1513_v44, %v1515_v46  ;;  %v586_v11 = vsel %vm582_vm7, %v1515_v46, %v1509_v42  ;;  %v530_v46 = vmul.f32 %v513_v18, %v506_v1 }
 0x1af   : > { %v613_v12 = vmul.f32 %v605_v61, %v583_v63  ;;  %v1618_v63 = vld [vmem:[#allocation5 + $0x7] ss:$8 sm:$0xf] }
 0x1b0   : > { %v744_v16 = vrot.slane %v1618_v63, %v1542_v60  ;;  %v748_v42 = vrot.slane %v1618_v63, %v1534_v56 }
 0x1b1   : > { %v1521_v50 = vpop.permute.xlu0 %455  ;;  %v820_v27 = vrot.slane %v613_v12, 4  ;;  %v672_v12 = vrot.slane %v1595_v32, %v1527_v53 }
 0x1b2   : > { %v1523_v51 = vpop.permute.xlu1 %457 }
 0x1b5   : > { %v1530_v54 = vpop.permute.xlu0 %459 }
 0x1b6   : > { %v1538_v58 = vpop.permute.xlu1 %534  ;;  %v464_v7 = vsel %vm463_vm8, %v1523_v51, %v1530_v54 }
 0x1b7   : > { %v493_v19 = vmul.f32 %v485_v2, %v464_v7  ;;  %v660_v2 = vrot.slane %v1595_v32, %v1532_v55  ;;  %v664_v7 = vrot.slane %v1595_v32, %v1542_v60  ;;  %v611_v32 = vmul.f32 %v597_v21, %v585_v9 }
 0x1b8   : > { %v805_v9 = vrot.slane %v530_v46, 4 }
 0x1b9   : > { %v1560_v3 = vpop.permute.xlu0 %536  ;;  %v852_v57 = vsel %vm346_vm0, %v493_v19, %v808_v26  ;;  %v752_v19 = vrot.slane %v1618_v63, %v1527_v53  ;;  %v521_v26 = vrot.slane %v1525_v52, %v1534_v56  ;;  %v818_v15 = vrot.slane %v611_v32, 4 }
 0x1ba   : > { %v1566_v8 = vpop.permute.xlu1 %538  ;;  %v545_v1 = vsel %vm542_vm9, %v1538_v58, %v1560_v3  ;;  %v465_v32 = vsel %vm463_vm8, %v1521_v50, %v1523_v51 }
 0x1bb   : > { %v544_v21 = vsel %vm542_vm9, %v1560_v3, %v1566_v8  ;;  %v571_v3 = vmul.f32 %v557_v34, %v545_v1 }
 0x1bd   : > { %v541_v20 = vpop.permute.xlu0 %540  ;;  %v854_v1 = vsel %vm346_vm0, %v571_v3, %v818_v15 }
 0x1be   : > { %v1585_v24 = vpop.permute.xlu1 %641  ;;  %v543_v25 = vsel %vm542_vm9, %v1566_v8, %v541_v20 }
 0x1bf   : > { %v573_v28 = vmul.f32 %v565_v13, %v543_v25  ;;  %v1641_v13 = vld [vmem:[#allocation5 + $0x6] ss:$8 sm:$0xf]  ;;  %v517_v25 = vrot.slane %v1525_v52, %v1542_v60 }
 0x1c1   : > { %v644_v49 = vpop.permute.xlu0 %643  ;;  %v856_v59 = vsel %vm346_vm0, %v573_v28, %v820_v27  ;;  %v1656_v27 = vld [vmem:[#allocation5 + $0x20] ss:$8 sm:$0xf]  ;;  %v584_v28 = vsel %vm582_vm7, %v1511_v43, %v1513_v44  ;;  %v467_v43 = vsel %vm463_vm8, %v1530_v54, %v1517_v47 }
 0x1c2   : > { %v646_v61 = vpop.permute.xlu1 %645  ;;  %v868_v62 = vpack.c.bf16 %v856_v59, %v852_v57  ;;  %v610_v57 = vmul.f32 %v593_v23, %v586_v11  ;;  %v546_v59 = vsel %vm542_vm9, %v541_v20, %v1538_v58  ;;  %v612_v11 = vmul.f32 %v601_v22, %v584_v28 }
 0x1c3   : > { %v570_v23 = vmul.f32 %v553_v36, %v546_v59  ;;  %v466_v22 = vsel %vm463_vm8, %v1517_v47, %v1521_v50  ;;  %v490_v46 = vmul.f32 %v473_v30, %v467_v43  ;;  %v651_v58 = vsel %vm649_vm10, %v644_v49, %v646_v61 }
 0x1c4   : > { %942 = vmatprep.subr.bf16.mxu1 %v868_v62  ;;  %v817_v20 = vrot.slane %v610_v57, 4  ;;  %v652_v28 = vsel %vm649_vm10, %v1585_v24, %v644_v49  ;;  %v819_v47 = vrot.slane %v612_v11, 4  ;;  %v572_v30 = vmul.f32 %v561_v37, %v544_v21 }
 0x1c5   : > { %v648_v14 = vpop.permute.xlu0 %647  ;;  %v1715_v18 = vmul.f32 %v660_v2, %v652_v28  ;;  %v678_v50 = vmul.f32 %v664_v7, %v651_v58  ;;  %v491_v34 = vmul.f32 %v477_v31, %v466_v22  ;;  %v492_v37 = vmul.f32 %v481_v45, %v465_v32 }
 0x1c6   : > { %v722_v17 = vpop.permute.xlu1 %721  ;;  %v653_v54 = vsel %vm649_vm10, %v648_v14, %v1585_v24  ;;  %v650_v8 = vsel %vm649_vm10, %v646_v61, %v648_v14  ;;  %v853_v49 = vsel %vm346_vm0, %v570_v23, %v817_v20  ;;  %v849_v61 = vsel %vm346_vm0, %v490_v46, %v805_v9 }
 0x1c7   : > { %v680_v36 = vmul.f32 %v672_v12, %v653_v54  ;;  %v679_v12 = vmul.f32 %v668_v41, %v650_v8  ;;  %v855_v20 = vsel %vm346_vm0, %v572_v30, %v819_v47  ;;  %v865_v0 = vpack.c.bf16 %v853_v49, %v849_v61 }
 0x1c8   : > { %v829_v45 = vrot.slane %v1715_v18, 4  ;;  %v830_v9 = vrot.slane %v678_v50, 4  ;;  %v1848_v18 = vrot.slane %v1618_v63, %v1532_v55  ;;  %v1852_v47 = vrot.slane %v1641_v13, %v1534_v56 }
 0x1c9   : > { %v724_v44 = vpop.permute.xlu0 %723  ;;  %v832_v14 = vrot.slane %v680_v36, 4  ;;  %v831_v15 = vrot.slane %v679_v12, 4  ;;  %v1851_v36 = vrot.slane %v1641_v13, %v1542_v60 }
 0x1ca   : > { %v726_v62 = vpop.permute.xlu1 %725  ;;  %v732_v31 = vsel %vm729_vm11, %v722_v17, %v724_v44 }
 0x1cb   : > { %v731_v59 = vsel %vm729_vm11, %v724_v44, %v726_v62 }
 0x1cc   : > { %v758_v2 = vmul.f32 %v744_v16, %v731_v59 }
 0x1cd   : > { %v728_v57 = vpop.permute.xlu0 %727 }
 0x1ce   : > { %v682_v43 = vpop.permute.xlu1 %681  ;;  %v730_v24 = vsel %vm729_vm11, %v726_v62, %v728_v57  ;;  %v733_v51 = vsel %vm729_vm11, %v728_v57, %v722_v17  ;;  %v842_v44 = vrot.slane %v758_v2, 4 }
 0x1cf   : > { %v759_v62 = vmul.f32 %v748_v42, %v730_v24  ;;  %v760_v21 = vmul.f32 %v752_v19, %v733_v51 }
 0x1d1   : > { %v684_v7 = vpop.permute.xlu0 %683  ;;  %v843_v11 = vrot.slane %v759_v62, 4  ;;  %v844_v22 = vrot.slane %v760_v21, 4 }
 0x1d2   : > { %v497_v23 = vpop.permute.xlu1 %496  ;;  %v692_v19 = vsel %vm689_vm12, %v682_v43, %v684_v7 }
 0x1d3   : > { %v504_v41 = vsel %vm502_vm6, %v497_v23, %v1505_v40  ;;  %v505_v16 = vsel %vm502_vm6, %v1503_v39, %v497_v23  ;;  %v757_v40 = vmul.f32 %v1848_v18, %v732_v31  ;;  %v860_v39 = vsel %vm346_vm0, %v1604_v38, %v832_v14 }
 0x1d4   : > { %v531_v42 = vmul.f32 %v517_v25, %v505_v16  ;;  %v532_v17 = vmul.f32 %v521_v26, %v504_v41  ;;  %v1849_v26 = vrot.slane %v1641_v13, %v1532_v55  ;;  %v1850_v38 = vrot.slane %v1641_v13, %v1527_v53 }
 0x1d5   : > { %v688_v54 = vpop.permute.xlu0 %687  ;;  %v857_v31 = vsel %vm346_vm0, %v1591_v29, %v829_v45  ;;  %v1855_v45 = vrot.slane %v1656_v27, %v1542_v60 }
 0x1d6   : > { %v806_v46 = vrot.slane %v531_v42, 4  ;;  %v807_v25 = vrot.slane %v532_v17, 4  ;;  %v686_v58 = vpop.permute.xlu1 %685  ;;  %v693_v52 = vsel %vm689_vm12, %v688_v54, %v682_v43  ;;  %v717_v28 = vmul.f32 %v1849_v26, %v692_v19 }
 0x1d7   : > { %v691_v63 = vsel %vm689_vm12, %v684_v7, %v686_v58  ;;  %v690_v32 = vsel %vm689_vm12, %v686_v58, %v688_v54  ;;  %v720_v3 = vmul.f32 %v1850_v38, %v693_v52  ;;  %v841_v43 = vrot.slane %v757_v40, 4 }
 0x1d8   : > { %v851_v8 = vsel %vm346_vm0, %v492_v37, %v807_v25  ;;  %v718_v57 = vmul.f32 %v1851_v36, %v691_v63  ;;  %v719_v30 = vmul.f32 %v1852_v47, %v690_v32  ;;  %v850_v59 = vsel %vm346_vm0, %v491_v34, %v806_v46 }
 0x1d9   : > { %v764_v24 = vpop.permute.xlu0 %763  ;;  %v866_v49 = vpack.c.bf16 %v854_v1, %v850_v59  ;;  %v867_v50 = vpack.c.bf16 %v855_v20, %v851_v8  ;;  %v864_v51 = vsel %vm346_vm0, %v720_v3, %v844_v22  ;;  %v858_v37 = vsel %vm346_vm0, %v1601_v35, %v830_v9 }
 0x1da   : > { %v863_v61 = vsel %vm346_vm0, %v719_v30, %v843_v11  ;;  %v762_v12 = vpop.permute.xlu1 %761  ;;  %v862_v14 = vsel %vm346_vm0, %v718_v57, %v842_v44  ;;  %v872_v2 = vpack.c.bf16 %v864_v51, %v860_v39  ;;  %v861_v13 = vsel %vm346_vm0, %v717_v28, %v841_v43 }
 0x1db   : > { %v772_v34 = vsel %vm769_vm13, %v762_v12, %v764_v24  ;;  %901 = vmatprep.subr.bf16.mxu0 %v866_v49  ;;  %943 = vmatpush1.bf16.msra.mxu1 %v867_v50  ;;  %v870_v62 = vpack.c.bf16 %v862_v14, %v858_v37  ;;  %v859_v7 = vsel %vm346_vm0, %v1598_v33, %v831_v15 }
 0x1dc   : > { %v1853_v1 = vrot.slane %v1656_v27, %v1532_v55  ;;  %902 = vmatpush1.bf16.msra.mxu0 %v865_v0  ;;  %944 = vmatprep.subr.bf16.mxu1 %v872_v2  ;;  %v788_v35 = vrot.slane %v1656_v27, %v1534_v56  ;;  %v871_v23 = vpack.c.bf16 %v863_v61, %v859_v7 }
 0x1dd   : > { %903 = vmatprep.subr.bf16.mxu0 %v870_v62  ;;  %v768_v21 = vpop.permute.xlu0 %767  ;;  %v869_v33 = vpack.c.bf16 %v861_v13, %v857_v31  ;;  %v1854_v56 = vrot.slane %v1656_v27, %v1527_v53  ;;  %v877_v53 = vld [vmem:[%s1428_s16] sm:$0xf] }
 0x1de   : > { %v797_v20 = vmul.f32 %v1853_v1, %v772_v34  ;;  %v766_v9 = vpop.permute.xlu1 %765  ;;  %v773_v41 = vsel %vm769_vm13, %v768_v21, %v762_v12 }
 0x1df   : > { %v771_v55 = vsel %vm769_vm13, %v764_v24, %v766_v9  ;;  %v770_v0 = vsel %vm769_vm13, %v766_v9, %v768_v21  ;;  %v800_v16 = vmul.f32 %v1854_v56, %v773_v41  ;;  %945 = vmatpush1.bf16.msra.mxu1 %v871_v23 }
 0x1e0   : > { %v873_v29 = vpack.c.bf16 %v797_v20, %v797_v20  ;;  %v798_v15 = vmul.f32 %v1855_v45, %v771_v55  ;;  %v799_v42 = vmul.f32 %v788_v35, %v770_v0  ;;  %904 = vmatpush1.bf16.msra.mxu0 %v869_v33 }
 0x1e1   : > { %v876_v17 = vpack.c.bf16 %v800_v16, %v800_v16 }
 0x1e2   : > { %v874_v19 = vpack.c.bf16 %v798_v15, %v798_v15  ;;  %v875_v18 = vpack.c.bf16 %v799_v42, %v799_v42  ;;  %v890_v48 = vsel %vm888_vm14, %v873_v29, 0 }
 0x1e3   : > { %1126 = vmatprep.subr.msk.bf16.mxu1 %vm888_vm14, %v876_v17 }
 0x1e4   : > { %1124 = vmatprep.subr.msk.bf16.mxu0 %vm888_vm14, %v874_v19  ;;  %v896_v40 = vsel %vm888_vm14, %v875_v18, 0 }
 0x1e5   : > { %906 = vmatpush1.bf16.msra.mxu0 %v890_v48  ;;  %947 = vmatpush1.bf16.msra.mxu1 %v896_v40 }
 0x1e8   : > { %1125 = vmatmul.mubr.msk.bf16.vlgmr.msra.gmra.mrb[4].mxu0 %vm884_vm15, %v877_v53  ;;  %1127 = vmatmul.mubr.msk.bf16.vlgmr.msra.gmra.mrb[4].mxu1 %vm884_vm15, %v877_v53 }
 0x1ef   : > { %v882_v44 = vpop.permute.xlu1 %881 }
 0x2bb   : > { %v935_v11 = vpop.f32.mrb[4].mxu0  ;;  %v976_v60 = vpop.f32.mrb[4].mxu1 }
 0x2bc   : > { %v936_v27 = vadd.f32 %v935_v11, %v882_v44  ;;  %v977_v54 = vadd.f32 %v976_v60, %v882_v44  ;;  %v937_v39 = vpop.f32.mrb[5].mxu0  ;;  %v978_v22 = vpop.f32.mrb[5].mxu1 }
 0x2bd   : > { %v938_v46 = vadd.f32 %v937_v39, %v882_v44  ;;  %v979_v25 = vadd.f32 %v978_v22, %v882_v44  ;;  %v939_v58 = vpop.f32.mrb[6].mxu0  ;;  %v980_v52 = vpop.f32.mrb[6].mxu1 }
 0x2be   : > { %vm983_vm0 = vcmp.gt.f32.partialorder %v936_v27, 0.0  ;;  %v987_v26 = vmul.f32 0.1, %v936_v27  ;;  %vm985_vm1 = vcmp.gt.f32.partialorder %v977_v54, 0.0  ;;  %v989_v28 = vmul.f32 0.1, %v977_v54 }
 0x2bf   : > { %vm984_vm2 = vcmp.gt.f32.partialorder %v938_v46, 0.0  ;;  %v988_v63 = vmul.f32 0.1, %v938_v46  ;;  %vm986_vm3 = vcmp.gt.f32.partialorder %v979_v25, 0.0  ;;  %v990_v32 = vmul.f32 0.1, %v979_v25 }
 0x2c0   : > { %v991_v38 = vsel %vm983_vm0, %v936_v27, %v987_v26  ;;  %v993_v3 = vsel %vm985_vm1, %v977_v54, %v989_v28  ;;  %v940_v8 = vpop.f32.mrb[7].mxu0  ;;  %v981_v36 = vpop.f32.mrb[7].mxu1 }
 0x2c1   : > { %v995_v57 = vadd.f32 %v991_v38, %v1441_v6  ;;  %v997_v47 = vadd.f32 %v993_v3, %v1449_v10  ;;  %v992_v30 = vsel %vm984_vm2, %v938_v46, %v988_v63  ;;  %v994_v59 = vsel %vm986_vm3, %v979_v25, %v990_v32 }
 0x2c2   : > { %v996_v43 = vadd.f32 %v992_v30, %v1437_v4  ;;  %v998_v24 = vadd.f32 %v994_v59, %v1439_v5 }
 0x2c3   : > { %999 = vst [vmem:[#allocation7] sm:$0xff] %v995_v57  ;;  %1001 = vst [vmem:[#allocation7 + $0x10] sm:$0xff] %v997_v47 }
 0x2c4   : > { %1000 = vst [vmem:[#allocation7 + $0x8] sm:$0xff] %v996_v43  ;;  %1002 = vst [vmem:[#allocation7 + $0x18] sm:$0xff] %v998_v24 }
 0x2c5   : > { %1250 = shalt.err (!%p1247_p7)
}
 0x2c6   : > { %s1251_s12 = scalar_lea.hbm %s1837_s6, 512 }
 0x2c7   : > { %p1252_p8 = scmp.ne.s32.totalorder %s1837_s6, %s1251_s12  ;;  %p1257_p4 = scmp.lt.u32.totalorder %s1251_s12, %s1837_s6 }
 0x2c9   : > { %p1253_p2 = pnand %p1252_p8, %p1155_p10 }
 0x2cb   : > { %p1254_p3 = pneg %p1253_p2 }
 0x2cd   : > { %p1259_p9 = pnand %p1257_p4, %p1254_p3 }
 0x2cf   : > { %1262 = shalt.err (!%p1259_p9)
}
 0x2d0   : > { %1141 = dma.vmem_to_hbm [thread:$0]  (%p1155_p10), %s1011_s25, 512, %s1837_s6, [#allocation4]  }
 0x2d1   : > { %1276 = dma.done.wait (%p1155_p10), [#allocation4], 512  }
 0x2d2   : > { %1278 = vsyncadd (%p1155_p10), [#allocation4], 4294966784 }
 0x2d3 PF: > { %s19_s21 = sadd.s32 1, %s1281_s21  }
 0x2d4   : > { %p16_p6 = scmp.ge.s32.totalorder %s19_s21, 4  }
 0x2d6   :  { %18 = sbr.rel (!%p16_p6) target bundleno = 3 (0x3), region = 101 }
 0x2dd   :  { %1023 = vsyncpa [#allocation3], 1 }
 0x2de   :  { %1025 = vsyncpa [#allocation3 + $0x1], 1 }
 0x2df   :  { %1026 = vsyncpa [#allocation6], 1 }
 0x2e0   :  { %1027 = vsyncpa [#allocation4], 1 }
 0x2e1   :  { %1029 = vsyncpa [#allocation4 + $0x1], 1 }

</bundles_post_ra>
